<compile_context>
chip_gen: v7x
topology: tpu7x:2x2x1
jax: 0.10.0
libtpu: 0.0.40
codegen_flags: <defaults>
</compile_context>

<pallas_src>
import functools
import math
from typing import NamedTuple

import jax
import jax.numpy as jnp
from jax.experimental import pallas as pl
from jax.experimental.pallas import tpu as pltpu

LANES = 128
_SINGLE_BLOCK_MAX_BYTES = 2 * 1024 * 1024  # ragged whole-array-in-one-block cutoff


class _ChipCfg(NamedTuple):
    tile_bytes: int      # target per-block VMEM footprint
    f32_compute: bool    # force f32 math for low-precision inputs (v5e: no bf16 VPU/EUP)
    num_tc: int          # TensorCores sharing the "parallel" grid axis


@functools.lru_cache(maxsize=1)
def _chip_config() -> _ChipCfg:
    kind = ""
    try:
        kind = jax.devices()[0].device_kind.lower()
    except Exception:
        pass
    if "lite" in kind or "v5e" in kind:        # v5e: 1 TC, no bf16 VPU/EUP, 16 MiB scoped VMEM default
        return _ChipCfg(2 << 20, True, 1)
    if "v6" in kind:                            # v6e
        return _ChipCfg(4 << 20, False, 1)
    if "v7" in kind or "tpu7" in kind:          # v7x: 2 TCs, 3.2 TB/s HBM
        return _ChipCfg(4 << 20, False, 2)
    if "v4" in kind or "v5" in kind:            # v4 / v5p megacore
        return _ChipCfg(2 << 20, True, 2)
    return _ChipCfg(2 << 20, True, 1)           # unknown backend: conservative defaults


def _round_up(a: int, m: int) -> int:
    return ((a + m - 1) // m) * m


def _sublane_mult(itemsize: int) -> int:
    # Sublane granularity for the block's second-to-last dim: 8 (f32), 16 (bf16/f16).
    return 8 * max(1, 4 // itemsize)


def _make_kernel(compute_f32: bool):
    def kernel(lam_ref, x_ref, o_ref):
        # lam_ref: (1,1) f32 in SMEM; x_ref / o_ref: VMEM tiles (any rank).
        x = x_ref[...]
        if compute_f32:
            y = lam_ref[0, 0] * jax.nn.sigmoid(x.astype(jnp.float32))
        else:
            # bf16-native path (v6e/v7x): keep the EUP stream in bf16 so HBM stays binding.
            y = lam_ref[0, 0].astype(x_ref.dtype) * jax.nn.sigmoid(x)
        o_ref[...] = y.astype(o_ref.dtype)
    return kernel


def _pick_width(total: int) -> int:
    # Widest lane-dense slab width (multiple of 128, up to 4096) dividing `total`.
    for cand in (4096, 2048, 1024, 512, 256):
        if total % cand == 0:
            return cand
    return LANES


def _padded_block_bytes(shape, itemsize: int) -> int:
    # Conservative VMEM footprint of the whole array as a single block ((8,128)-tiled).
    if len(shape) == 0:
        return 8 * LANES * itemsize
    if len(shape) == 1:
        return _round_up(shape[-1], LANES) * 8 * itemsize
    lead = math.prod(shape[:-2]) if len(shape) > 2 else 1
    return (lead * _round_up(shape[-2], _sublane_mult(itemsize))
            * _round_up(shape[-1], LANES) * itemsize)


def _sigmoid_slab(slab: jax.Array, lam: jax.Array, cfg: _ChipCfg, compute_f32: bool) -> jax.Array:
    """Tiled elementwise kernel over a lane-dense (rows, width) slab; rows*width % 128 == 0."""
    rows, width = slab.shape
    itemsize = slab.dtype.itemsize
    mult = _sublane_mult(itemsize)
    target_rows = max(mult, (cfg.tile_bytes // (width * itemsize)) // mult * mult)

    if rows <= target_rows:
        r_blk = rows  # single full block (always a legal block shape)
        # v7x/megacore: split a big single block across the 2 TensorCores.
        if cfg.num_tc >= 2 and rows >= 2 * mult and rows * width * itemsize > (1 << 20):
            r_blk = _round_up(pl.cdiv(rows, 2), mult)
    else:
        r_blk = target_rows
        if cfg.num_tc >= 2:
            nblk = pl.cdiv(rows, r_blk)
            if nblk % 2 == 1:
                cand = _round_up(pl.cdiv(rows, nblk + 1), mult)
                if cand >= mult and pl.cdiv(rows, cand) % 2 == 0:
                    r_blk = cand

    grid = (pl.cdiv(rows, r_blk),)
    return pl.pallas_call(
        _make_kernel(compute_f32),
        out_shape=jax.ShapeDtypeStruct((rows, width), slab.dtype),
        grid=grid,
        in_specs=[
            pl.BlockSpec(memory_space=pltpu.SMEM),            # lambda scalar
            pl.BlockSpec((r_blk, width), lambda i: (i, 0)),   # input tile
        ],
        out_specs=pl.BlockSpec((r_blk, width), lambda i: (i, 0)),
        compiler_params=pltpu.CompilerParams(
            dimension_semantics=("parallel",),
        ),
    )(lam, slab)


def _sigmoid_full_block(x: jax.Array, lam: jax.Array, compute_f32: bool) -> jax.Array:
    """Whole (small, possibly ragged) array as one VMEM block — zero extra HBM passes."""
    return pl.pallas_call(
        _make_kernel(compute_f32),
        out_shape=jax.ShapeDtypeStruct(x.shape, x.dtype),
        in_specs=[
            pl.BlockSpec(memory_space=pltpu.SMEM),
            pl.BlockSpec(memory_space=pltpu.VMEM),
        ],
        out_specs=pl.BlockSpec(memory_space=pltpu.VMEM),
    )(lam, x)


@jax.jit
def adaptive_sigmoid(x: jax.Array, lambda_param: jax.Array) -> jax.Array:
    """out = lambda_param * sigmoid(x), elementwise, any shape / float dtype."""
    orig_shape = x.shape
    orig_dtype = x.dtype
    n = x.size
    cfg = _chip_config()

    lam_f32 = jnp.asarray(lambda_param, dtype=jnp.float32)
    lam = lam_f32.reshape(1, 1)

    # Dtypes the TPU kernel handles natively; everything else uses one fused XLA op.
    if orig_dtype not in (jnp.float32, jnp.bfloat16, jnp.float16) or n == 0:
        # TODO(synk): exotic dtypes (e.g. f64) fall back to XLA's fused elementwise.
        return (lam_f32 * jax.nn.sigmoid(x.astype(jnp.float32))).astype(orig_dtype)

    compute_f32 = cfg.f32_compute or (orig_dtype != jnp.bfloat16)
    itemsize = orig_dtype.itemsize

    # ---------- aligned fast path: lane-dense slab, no copies ----------
    if n % LANES == 0:
        width = _pick_width(n)
        rows = n // width
        out = _sigmoid_slab(x.reshape(rows, width), lam, cfg, compute_f32)
        return out.reshape(orig_shape)

    # ---------- ragged paths (numel % 128 != 0) ----------
    if n < LANES:
        # Tiny tensor: a single fused XLA op is already optimal (one HBM pass).
        return (lam_f32 * jax.nn.sigmoid(x.astype(jnp.float32))).astype(orig_dtype)

    if _padded_block_bytes(orig_shape, itemsize) <= _SINGLE_BLOCK_MAX_BYTES:
        # Small ragged tensor: whole original-shape array as one block, zero copies.
        return _sigmoid_full_block(x, lam, compute_f32)

    # Large ragged tensor: kernel on the 128-aligned prefix, tiny jnp op on the
    # <128-element tail. Avoids the old full-tensor pad copy + post-slice copy.
    flat = x.reshape(-1)
    n_aligned = n - (n % LANES)
    width = _pick_width(n_aligned)
    rows = n_aligned // width
    head_out = _sigmoid_slab(flat[:n_aligned].reshape(rows, width), lam, cfg, compute_f32)
    tail = flat[n_aligned:]
    tail_out = (lam_f32 * jax.nn.sigmoid(tail.astype(jnp.float32))).astype(orig_dtype)
    return jnp.concatenate([head_out.reshape(-1), tail_out]).reshape(orig_shape)


if __name__ == "__main__":
    key = jax.random.PRNGKey(0)
    k1, k2, k3, k4, k5 = jax.random.split(key, 5)
    lambda_init = jnp.float32(1.0)  # matches nn.Parameter(torch.tensor(1.0))

    # 1) Small NCHW input, like the PyTorch module would receive (aligned, single block).
    x = jax.random.normal(k1, (2, 4, 16, 16), dtype=jnp.float32)
    out = jax.block_until_ready(adaptive_sigmoid(x, lambda_init))
    ref = lambda_init * jax.nn.sigmoid(x)
    assert out.shape == x.shape and out.dtype == x.dtype
    assert float(jnp.max(jnp.abs(out - ref))) < 1e-6

    # 2) Larger aligned input exercises the multi-block tiled path (grid > 1).
    x2 = jax.random.normal(k2, (2, 16, 128, 128), dtype=jnp.float32)
    lam2 = jnp.float32(1.7)
    out2 = jax.block_until_ready(adaptive_sigmoid(x2, lam2))
    ref2 = lam2 * jax.nn.sigmoid(x2)
    assert float(jnp.max(jnp.abs(out2 - ref2))) < 1e-5

    # 3) Ragged small tensor (numel % 128 != 0): single full-shape block, no pad copy.
    x3 = jax.random.normal(k3, (3, 5, 7, 11), dtype=jnp.float32)
    out3 = jax.block_until_ready(adaptive_sigmoid(x3, lambda_init))
    ref3 = lambda_init * jax.nn.sigmoid(x3)
    assert out3.shape == x3.shape
    assert float(jnp.max(jnp.abs(out3 - ref3))) < 1e-6

    # 4) Ragged larger tensor: aligned-prefix kernel + tiny jnp tail.
    x4 = jax.random.normal(k4, (520, 1027), dtype=jnp.float32)
    lam4 = jnp.float32(0.9)
    out4 = jax.block_until_ready(adaptive_sigmoid(x4, lam4))
    ref4 = lam4 * jax.nn.sigmoid(x4)
    assert out4.shape == x4.shape
    assert float(jnp.max(jnp.abs(out4 - ref4))) < 1e-5

    # 5) bf16 input (native bf16 compute on v6e/v7x, f32 compute on v5e).
    x5 = jax.random.normal(k5, (2, 4, 16, 16), dtype=jnp.float32).astype(jnp.bfloat16)
    lam5 = jnp.float32(0.75)
    out5 = jax.block_until_ready(adaptive_sigmoid(x5, lam5))
    ref5 = (lam5 * jax.nn.sigmoid(x5.astype(jnp.float32))).astype(jnp.bfloat16)
    assert out5.dtype == jnp.bfloat16
    assert float(jnp.max(jnp.abs(out5.astype(jnp.float32) - ref5.astype(jnp.float32)))) < 2e-2

    print("KERNEL_OK")
</pallas_src>

<mosaic_0001>
module attributes {stable_mosaic.version = 11 : i64} {
  func.func @kernel(%arg0: i32, %arg1: memref<1x1xf32, #tpu.memory_space<smem>>, %arg2: memref<1x2048xf32, #tpu.memory_space<vmem>>, %arg3: memref<1x2048xf32, #tpu.memory_space<vmem>>) attributes {dimension_semantics = [#tpu.dimension_semantics<parallel>], iteration_bounds = array<i64: 1>, scalar_prefetch = 0 : i64, scratch_operands = 0 : i64, tpu.core_type = #tpu.core_type<tc>, window_params = [{transform_indices = @transform_0, window_bounds = array<i64: 1, 1>}, {transform_indices = @transform_1, window_bounds = array<i64: 1, 2048>}, {transform_indices = @transform_2, window_bounds = array<i64: 1, 2048>}]} {
    %c0 = arith.constant 0 : index
    %c0_0 = arith.constant 0 : index
    %0 = vector.load %arg2[%c0, %c0_0] : memref<1x2048xf32, #tpu.memory_space<vmem>>, vector<1x2048xf32>
    %c0_1 = arith.constant 0 : index
    %c0_2 = arith.constant 0 : index
    %1 = memref.load %arg1[%c0_1, %c0_2] : memref<1x1xf32, #tpu.memory_space<smem>>
    %2 = arith.negf %0 : vector<1x2048xf32>
    %3 = math.exp %2 : vector<1x2048xf32>
    %cst = arith.constant 1.000000e+00 : f32
    %4 = vector.broadcast %cst : f32 to vector<1x2048xf32>
    %5 = arith.addf %4, %3 : vector<1x2048xf32>
    %6 = arith.divf %4, %5 : vector<1x2048xf32>
    %7 = vector.broadcast %1 : f32 to vector<1x2048xf32>
    %8 = arith.mulf %7, %6 : vector<1x2048xf32>
    %c0_3 = arith.constant 0 : index
    %c0_4 = arith.constant 0 : index
    %9 = vector.load %arg3[%c0_3, %c0_4] : memref<1x2048xf32, #tpu.memory_space<vmem>>, vector<1x2048xf32>
    tpu.vector_store %arg3[%c0_3, %c0_4], %8 {strides = array<i32>} : memref<1x2048xf32, #tpu.memory_space<vmem>>, vector<1x2048xf32>,
    return
  }
  func.func @transform_0(%arg0: i32) -> (i32, i32) {
    %c0_i32 = arith.constant 0 : i32
    %c0_i32_0 = arith.constant 0 : i32
    %c0_i32_1 = arith.constant 0 : i32
    return %c0_i32, %c0_i32_0 : i32, i32
  }
  func.func @transform_1(%arg0: i32) -> (i32, i32) {
    %c0_i32 = arith.constant 0 : i32
    %c0_i32_0 = arith.constant 0 : i32
    return %arg0, %c0_i32 : i32, i32
  }
  func.func @transform_2(%arg0: i32) -> (i32, i32) {
    %c0_i32 = arith.constant 0 : i32
    %c0_i32_0 = arith.constant 0 : i32
    return %arg0, %c0_i32 : i32, i32
  }
}

</mosaic_0001>

<bundles_post_ra>
// kernel: adaptive_sigmoid.1
= control target key start
LH: loop header
LB: loop body
LE: loop exit
PB: predicated region body
PF: predicated region fallthrough
CT: control target
= control target key end

     0   :  { %s76_s1 = inlined_call_operand.vmem [shape: f32[1,2048], index: 1, kind: input, shape index: {}]   ;;  %s77_s0 = inlined_call_operand.<no memory space> [shape: f32[1,1], index: 0, kind: input, shape index: {}]   ;;  %s78_s2 = inlined_call_operand.vmem [shape: f32[1,2048], index: 2, kind: output, shape index: {}]  }
   0x1   :  { %v12_v0 = vld [vmem:[%s76_s1] sm:$0xff]  ;;  %v13_v1 = vld [vmem:[%s76_s1 + $0x8] sm:$0xff]  ;;  %v27_v8 = vstv %s77_s0 }
   0x2   :  { %v36_v2 = vmul.f32 -1.442695, %v12_v0  ;;  %v37_v3 = vmul.f32 -1.442695, %v13_v1 }
   0x4   :  { %38 = vpow2.f32 %v36_v2 }
   0x5   :  { %40 = vpow2.f32 %v37_v3 }
   0xe   :  { %v39_v4 = vpop.eup %38 }
   0xf   :  { %v41_v5 = vpop.eup %40  ;;  %v21_v6 = vadd.f32 1.0, %v39_v4 }
  0x10   :  { %v22_v7 = vadd.f32 1.0, %v41_v5 }
  0x11   :  { %42 = vrcp.f32 %v21_v6 }
  0x12   :  { %44 = vrcp.f32 %v22_v7 }
  0x1b   :  { %v43_v9 = vpop.eup %42 }
  0x1c   :  { %v45_v10 = vpop.eup %44  ;;  %v28_v11 = vmul.f32 %v43_v9, %v27_v8 }
  0x1d   :  { %v29_v12 = vmul.f32 %v45_v10, %v27_v8 }
  0x1e   :  { %30 = vst [vmem:[%s78_s2] sm:$0xff] %v28_v11 }
  0x1f   :  { %31 = vst [vmem:[%s78_s2 + $0x8] sm:$0xff] %v29_v12 }

</bundles_post_ra>
